<compile_context>
chip_gen: v7x
topology: tpu7x:2x2x1
jax: 0.10.0
libtpu: 0.0.40
codegen_flags: <defaults>
</compile_context>

<pallas_src>
import functools

import jax
import jax.numpy as jnp
from jax.experimental import pallas as pl
from jax.experimental.pallas import tpu as pltpu


# ---------------------------------------------------------------------------
# Pass 1: fused 1x1-conv projections  [v; q; k] = W_all @ x + b_all
# Computed once per spatial tile (hoisted out of the attention kv loop).
# ---------------------------------------------------------------------------
def _proj_kernel(x_ref, w_ref, b_ref, q_ref, k_ref, v_ref, *, C, C8):
    # (C + 2*C8, C) @ (C, tp) -> (C + 2*C8, tp); bf16 operands, f32 accumulation.
    p = jnp.dot(w_ref[...], x_ref[...],
                preferred_element_type=jnp.float32) + b_ref[...]
    v_ref[...] = p[:C].astype(v_ref.dtype)
    q_ref[...] = p[C:C + C8].astype(q_ref.dtype)
    k_ref[...] = p[C + C8:].astype(k_ref.dtype)


# ---------------------------------------------------------------------------
# Pass 2: flash-style spatial self-attention + gamma residual.
# Grid (B, N//tq, N//tkv); kv axis ("arbitrary") is the online-softmax reduction.
# ---------------------------------------------------------------------------
def _attn_kernel(x_ref, q_ref, k_ref, v_ref, gamma_ref, out_ref,
                 m_sc, l_sc, acc_sc, *, n_valid, n_padded):
    ki = pl.program_id(2)

    @pl.when(ki == 0)
    def _():
        m_sc[...] = jnp.full(m_sc.shape, -jnp.inf, jnp.float32)
        l_sc[...] = jnp.zeros(l_sc.shape, jnp.float32)
        acc_sc[...] = jnp.zeros(acc_sc.shape, jnp.float32)

    qt = q_ref[...]                                    # (C8, tq)  bf16
    kt = k_ref[...]                                    # (C8, tkv) bf16
    vt = v_ref[...]                                    # (C,  tkv) bf16

    # scores s[j, i] = k_j . q_i  (keys on sublanes, queries on lanes).
    # Contraction over dim 0 of both operands -> MXU-native, no transposes.
    s = jax.lax.dot_general(kt, qt, (((0,), (0,)), ((), ())),
                            preferred_element_type=jnp.float32)       # (tkv, tq)

    if n_valid != n_padded:
        tkv = kt.shape[1]
        key_idx = jax.lax.broadcasted_iota(jnp.int32, s.shape, 0) + ki * tkv
        s = jnp.where(key_idx < n_valid, s, -jnp.inf)   # mask padded key columns

    # online softmax over the key axis (axis 0); exp in f32, p fed to MXU in bf16.
    m_prev = m_sc[...]
    m_new = jnp.maximum(m_prev, jnp.max(s, axis=0, keepdims=True))    # (1, tq)
    alpha = jnp.exp(m_prev - m_new)                                   # (1, tq)
    p = jnp.exp(s - m_new)                                            # (tkv, tq)
    l_sc[...] = alpha * l_sc[...] + jnp.sum(p, axis=0, keepdims=True)
    acc_sc[...] = alpha * acc_sc[...] + jnp.dot(
        vt, p.astype(jnp.bfloat16), preferred_element_type=jnp.float32)  # (C, tq)
    m_sc[...] = m_new

    # finalize: normalize + gamma residual (residual uses exact f32 x).
    @pl.when(ki == pl.num_programs(2) - 1)
    def _():
        inv_l = pl.reciprocal(l_sc[...], approx=True)                 # (1, tq)
        out_ref[...] = (gamma_ref[0, 0] * (acc_sc[...] * inv_l)
                        + x_ref[...]).astype(out_ref.dtype)


# ---------------------------------------------------------------------------
# Tiling / compiler-parameter helpers
# ---------------------------------------------------------------------------
def _round_up(n, m):
    return ((n + m - 1) // m) * m


def _pick_tile(n, cap=1024):
    for t in (1024, 512, 256, 128):
        if t <= cap and t <= n and n % t == 0:
            return t
    return n


def _pick_query_tile(n, batch, cap=1024):
    t = _pick_tile(n, cap)
    # v7x has 2 TensorCores; if the batch axis can't feed both, make sure the
    # (parallel) query axis has at least 2 iterations.
    if batch < 2:
        while t > 128 and n // t < 2:
            t //= 2
    return t


def _vmem_limit_bytes():
    default = 48 * 1024 * 1024           # safe on v7x (64 MiB physical)
    try:
        cap = getattr(pltpu.get_tpu_info(), "vmem_capacity_bytes", None)
    except Exception:
        return default
    if not cap:
        return default
    return min((3 * cap) // 4, 64 * 1024 * 1024)   # ~64 MiB on v5e/v6e, 48 on v7x


# ---------------------------------------------------------------------------
# Wrapper
# ---------------------------------------------------------------------------
def self_attention(x, wq, bq, wk, bk, wv, bv, gamma):
    """SAGAN SelfAttention forward.

    x:  (B, C, W, H) float32
    wq, wk: (C//8, C)   (PyTorch Conv2d weight (C_out, C_in, 1, 1) squeezed)
    bq, bk: (C//8,)
    wv: (C, C), bv: (C,)
    gamma: (1,)
    returns (B, C, W, H)
    """
    B, C, W, H = x.shape
    N = W * H
    C8 = wq.shape[0]
    Np = _round_up(N, 128)                        # lane-dense, any W*H

    x_flat = x.reshape(B, C, N).astype(jnp.float32)     # no HBM transpose
    if Np != N:
        x_flat = jnp.pad(x_flat, ((0, 0), (0, 0), (0, Np - N)))
    x_bf16 = x_flat.astype(jnp.bfloat16)

    # fused [Wv; Wq; Wk] so the projection pass is a single MXU matmul per tile.
    w_all = jnp.concatenate([wv, wq, wk], axis=0).astype(jnp.bfloat16)  # (C+2C8, C)
    b_all = jnp.concatenate([bv, bq, bk], axis=0).reshape(-1, 1).astype(jnp.float32)
    gamma_m = jnp.asarray(gamma, jnp.float32).reshape(1, 1)

    vmem_limit = _vmem_limit_bytes()

    # ---------------- pass 1: q/k/v projections (computed once) ----------------
    tp = _pick_tile(Np)
    q_proj, k_proj, v_proj = pl.pallas_call(
        functools.partial(_proj_kernel, C=C, C8=C8),
        out_shape=[jax.ShapeDtypeStruct((B, C8, Np), jnp.bfloat16),
                   jax.ShapeDtypeStruct((B, C8, Np), jnp.bfloat16),
                   jax.ShapeDtypeStruct((B, C, Np), jnp.bfloat16)],
        grid_spec=pltpu.PrefetchScalarGridSpec(
            num_scalar_prefetch=0,
            grid=(B, Np // tp),
            in_specs=[
                pl.BlockSpec((None, C, tp), lambda b, i: (b, 0, i)),      # x (bf16)
                pl.BlockSpec((C + 2 * C8, C), lambda b, i: (0, 0)),       # [Wv;Wq;Wk]
                pl.BlockSpec((C + 2 * C8, 1), lambda b, i: (0, 0)),       # [bv;bq;bk]
            ],
            out_specs=[
                pl.BlockSpec((None, C8, tp), lambda b, i: (b, 0, i)),     # q
                pl.BlockSpec((None, C8, tp), lambda b, i: (b, 0, i)),     # k
                pl.BlockSpec((None, C, tp), lambda b, i: (b, 0, i)),      # v
            ],
        ),
        compiler_params=pltpu.CompilerParams(
            dimension_semantics=("parallel", "parallel"),
            vmem_limit_bytes=vmem_limit,
        ),
    )(x_bf16, w_all, b_all)

    # ---------------- pass 2: flash attention + gamma residual -----------------
    tq = _pick_query_tile(Np, B)
    tkv = _pick_tile(Np)
    grid = (B, Np // tq, Np // tkv)

    out_flat = pl.pallas_call(
        functools.partial(_attn_kernel, n_valid=N, n_padded=Np),
        out_shape=jax.ShapeDtypeStruct((B, C, Np), jnp.float32),
        grid_spec=pltpu.PrefetchScalarGridSpec(
            num_scalar_prefetch=0,
            grid=grid,
            in_specs=[
                pl.BlockSpec((None, C, tq), lambda b, qi, ki: (b, 0, qi)),    # x (f32, residual)
                pl.BlockSpec((None, C8, tq), lambda b, qi, ki: (b, 0, qi)),   # q tile (bf16)
                pl.BlockSpec((None, C8, tkv), lambda b, qi, ki: (b, 0, ki)),  # k tile (bf16)
                pl.BlockSpec((None, C, tkv), lambda b, qi, ki: (b, 0, ki)),   # v tile (bf16)
                pl.BlockSpec(memory_space=pltpu.MemorySpace.SMEM),            # gamma
            ],
            out_specs=pl.BlockSpec((None, C, tq), lambda b, qi, ki: (b, 0, qi)),
            scratch_shapes=[
                pltpu.VMEM((1, tq), jnp.float32),    # running max
                pltpu.VMEM((1, tq), jnp.float32),    # running denominator
                pltpu.VMEM((C, tq), jnp.float32),    # output accumulator
            ],
        ),
        compiler_params=pltpu.CompilerParams(
            dimension_semantics=("parallel", "parallel", "arbitrary"),
            vmem_limit_bytes=vmem_limit,
        ),
    )(x_flat, q_proj, k_proj, v_proj, gamma_m)

    return out_flat[:, :, :N].reshape(B, C, W, H)


# ---------------------------------------------------------------------------
# Pure-JAX mirror of the PyTorch forward for verification.
# ---------------------------------------------------------------------------
def reference(x, wq, bq, wk, bk, wv, bv, gamma):
    B, C, W, H = x.shape
    N = W * H
    xf = x.reshape(B, C, N)
    q = jnp.einsum('oc,bcn->bon', wq, xf) + bq[None, :, None]     # (B, C8, N)
    k = jnp.einsum('oc,bcn->bon', wk, xf) + bk[None, :, None]     # (B, C8, N)
    v = jnp.einsum('oc,bcn->bon', wv, xf) + bv[None, :, None]     # (B, C,  N)
    energy = jnp.einsum('bci,bcj->bij', q, k)                     # (B, N, N)
    attn = jax.nn.softmax(energy, axis=-1)
    out = jnp.einsum('bij,bcj->bci', attn, v)                     # (B, C, N)
    out = gamma[0] * out + xf
    return out.reshape(B, C, W, H)


if __name__ == "__main__":
    def run_case(B, C, W, H, key):
        C8 = max(C // 8, 1)
        ks = jax.random.split(key, 7)
        x = jax.random.normal(ks[0], (B, C, W, H), dtype=jnp.float32)
        wq = jax.random.normal(ks[1], (C8, C), dtype=jnp.float32) * 0.1
        bq = jax.random.normal(ks[2], (C8,), dtype=jnp.float32) * 0.1
        wk = jax.random.normal(ks[3], (C8, C), dtype=jnp.float32) * 0.1
        bk = jax.random.normal(ks[4], (C8,), dtype=jnp.float32) * 0.1
        wv = jax.random.normal(ks[5], (C, C), dtype=jnp.float32) * 0.1
        bv = jax.random.normal(ks[6], (C,), dtype=jnp.float32) * 0.1
        # PyTorch inits gamma to 0 (attention path invisible); use nonzero here.
        gamma = jnp.array([0.5], dtype=jnp.float32)

        out = jax.block_until_ready(
            self_attention(x, wq, bq, wk, bk, wv, bv, gamma))
        ref = reference(x, wq, bq, wk, bk, wv, bv, gamma)
        assert out.shape == (B, C, W, H)
        err = float(jnp.max(jnp.abs(out - ref)))
        # bf16 MXU operands (f32 accumulation) => slightly looser tolerance.
        assert jnp.allclose(out, ref, rtol=2e-2, atol=2e-2), f"max abs err {err}"

    key = jax.random.PRNGKey(0)
    k1, k2, k3, k4 = jax.random.split(key, 4)
    run_case(2, 16, 16, 16, k1)   # N = 256  -> one 256 tile per axis
    run_case(2, 16, 8, 8, k2)     # N = 64   -> padded to 128, key mask exercised
    run_case(2, 16, 32, 32, k3)   # N = 1024 -> single 1024 tile per axis
    run_case(1, 16, 28, 28, k4)   # N = 784  -> padded to 896, 7x7 flash tiles, B=1
    print("KERNEL_OK")
</pallas_src>

<mosaic_0001>
module attributes {stable_mosaic.version = 11 : i64} {
  func.func @_proj_kernel(%arg0: i32, %arg1: i32, %arg2: memref<1x16x256xbf16, #tpu.memory_space<vmem>>, %arg3: memref<20x16xbf16, #tpu.memory_space<vmem>>, %arg4: memref<20x1xf32, #tpu.memory_space<vmem>>, %arg5: memref<1x2x256xbf16, #tpu.memory_space<vmem>>, %arg6: memref<1x2x256xbf16, #tpu.memory_space<vmem>>, %arg7: memref<1x16x256xbf16, #tpu.memory_space<vmem>>) attributes {dimension_semantics = [#tpu.dimension_semantics<parallel>, #tpu.dimension_semantics<parallel>], iteration_bounds = array<i64: 2, 1>, scalar_prefetch = 0 : i64, scratch_operands = 0 : i64, tpu.core_type = #tpu.core_type<tc>, window_params = [{transform_indices = @transform_0, window_bounds = array<i64: 1, 16, 256>}, {pipeline_mode = #tpu.pipeline_mode<synchronous>, transform_indices = @transform_1, window_bounds = array<i64: 20, 16>}, {pipeline_mode = #tpu.pipeline_mode<synchronous>, transform_indices = @transform_2, window_bounds = array<i64: 20, 1>}, {transform_indices = @transform_3, window_bounds = array<i64: 1, 2, 256>}, {transform_indices = @transform_4, window_bounds = array<i64: 1, 2, 256>}, {transform_indices = @transform_5, window_bounds = array<i64: 1, 16, 256>}]} {
    %c0 = arith.constant 0 : index
    %c0_0 = arith.constant 0 : index
    %0 = vector.load %arg3[%c0, %c0_0] : memref<20x16xbf16, #tpu.memory_space<vmem>>, vector<20x16xbf16>
    %c0_1 = arith.constant 0 : index
    %c0_2 = arith.constant 0 : index
    %c0_3 = arith.constant 0 : index
    %1 = vector.load %arg2[%c0_1, %c0_2, %c0_3] : memref<1x16x256xbf16, #tpu.memory_space<vmem>>, vector<1x16x256xbf16>
    %2 = vector.shape_cast %1 : vector<1x16x256xbf16> to vector<16x256xbf16>
    %cst = arith.constant dense<0.000000e+00> : vector<20x256xf32>
    %3 = tpu.matmul %0, %2, %cst {dimension_numbers = #tpu.dot_dimension_numbers<[1], [0], [0], [1], [0, 0, 1, 1], [], []>} : vector<20x16xbf16>, vector<16x256xbf16>, vector<20x256xf32> -> vector<20x256xf32>
    %c0_4 = arith.constant 0 : index
    %c0_5 = arith.constant 0 : index
    %4 = vector.load %arg4[%c0_4, %c0_5] : memref<20x1xf32, #tpu.memory_space<vmem>>, vector<20x1xf32>
    %5 = vector.broadcast %4 : vector<20x1xf32> to vector<20x256xf32>
    %6 = arith.addf %3, %5 : vector<20x256xf32>
    %7 = vector.extract_strided_slice %6 {offsets = [0, 0], sizes = [16, 256], strides = [1, 1]} : vector<20x256xf32> to vector<16x256xf32>
    %8 = arith.truncf %7 : vector<16x256xf32> to vector<16x256xbf16>
    %c0_6 = arith.constant 0 : index
    %c0_7 = arith.constant 0 : index
    %c0_8 = arith.constant 0 : index
    %9 = vector.load %arg7[%c0_6, %c0_7, %c0_8] : memref<1x16x256xbf16, #tpu.memory_space<vmem>>, vector<1x16x256xbf16>
    %10 = vector.shape_cast %9 : vector<1x16x256xbf16> to vector<16x256xbf16>
    %11 = vector.shape_cast %8 : vector<16x256xbf16> to vector<1x16x256xbf16>
    tpu.vector_store %arg7[%c0_6, %c0_7, %c0_8], %11 {strides = array<i32>} : memref<1x16x256xbf16, #tpu.memory_space<vmem>>, vector<1x16x256xbf16>,
    %12 = vector.extract_strided_slice %6 {offsets = [16, 0], sizes = [2, 256], strides = [1, 1]} : vector<20x256xf32> to vector<2x256xf32>
    %13 = arith.truncf %12 : vector<2x256xf32> to vector<2x256xbf16>
    %c0_9 = arith.constant 0 : index
    %c0_10 = arith.constant 0 : index
    %c0_11 = arith.constant 0 : index
    %14 = vector.load %arg5[%c0_9, %c0_10, %c0_11] : memref<1x2x256xbf16, #tpu.memory_space<vmem>>, vector<1x2x256xbf16>
    %15 = vector.shape_cast %14 : vector<1x2x256xbf16> to vector<2x256xbf16>
    %16 = vector.shape_cast %13 : vector<2x256xbf16> to vector<1x2x256xbf16>
    tpu.vector_store %arg5[%c0_9, %c0_10, %c0_11], %16 {strides = array<i32>} : memref<1x2x256xbf16, #tpu.memory_space<vmem>>, vector<1x2x256xbf16>,
    %17 = vector.extract_strided_slice %6 {offsets = [18, 0], sizes = [2, 256], strides = [1, 1]} : vector<20x256xf32> to vector<2x256xf32>
    %18 = arith.truncf %17 : vector<2x256xf32> to vector<2x256xbf16>
    %c0_12 = arith.constant 0 : index
    %c0_13 = arith.constant 0 : index
    %c0_14 = arith.constant 0 : index
    %19 = vector.load %arg6[%c0_12, %c0_13, %c0_14] : memref<1x2x256xbf16, #tpu.memory_space<vmem>>, vector<1x2x256xbf16>
    %20 = vector.shape_cast %19 : vector<1x2x256xbf16> to vector<2x256xbf16>
    %21 = vector.shape_cast %18 : vector<2x256xbf16> to vector<1x2x256xbf16>
    tpu.vector_store %arg6[%c0_12, %c0_13, %c0_14], %21 {strides = array<i32>} : memref<1x2x256xbf16, #tpu.memory_space<vmem>>, vector<1x2x256xbf16>,
    return
  }
  func.func @transform_0(%arg0: i32, %arg1: i32) -> (i32, i32, i32) {
    %c0_i32 = arith.constant 0 : i32
    %c0_i32_0 = arith.constant 0 : i32
    return %arg0, %c0_i32, %arg1 : i32, i32, i32
  }
  func.func @transform_1(%arg0: i32, %arg1: i32) -> (i32, i32) {
    %c0_i32 = arith.constant 0 : i32
    %c0_i32_0 = arith.constant 0 : i32
    %c0_i32_1 = arith.constant 0 : i32
    return %c0_i32, %c0_i32_0 : i32, i32
  }
  func.func @transform_2(%arg0: i32, %arg1: i32) -> (i32, i32) {
    %c0_i32 = arith.constant 0 : i32
    %c0_i32_0 = arith.constant 0 : i32
    %c0_i32_1 = arith.constant 0 : i32
    return %c0_i32, %c0_i32_0 : i32, i32
  }
  func.func @transform_3(%arg0: i32, %arg1: i32) -> (i32, i32, i32) {
    %c0_i32 = arith.constant 0 : i32
    %c0_i32_0 = arith.constant 0 : i32
    return %arg0, %c0_i32, %arg1 : i32, i32, i32
  }
  func.func @transform_4(%arg0: i32, %arg1: i32) -> (i32, i32, i32) {
    %c0_i32 = arith.constant 0 : i32
    %c0_i32_0 = arith.constant 0 : i32
    return %arg0, %c0_i32, %arg1 : i32, i32, i32
  }
  func.func @transform_5(%arg0: i32, %arg1: i32) -> (i32, i32, i32) {
    %c0_i32 = arith.constant 0 : i32
    %c0_i32_0 = arith.constant 0 : i32
    return %arg0, %c0_i32, %arg1 : i32, i32, i32
  }
}

</mosaic_0001>

<bundles_post_ra>
// kernel: tpu_custom_call.1
= control target key start
LH: loop header
LB: loop body
LE: loop exit
PB: predicated region body
PF: predicated region fallthrough
CT: control target
= control target key end

     0   :  { %s1133_s0 = inlined_call_operand.vmem [shape: bf16[2,16,256], index: 0, kind: input, shape index: {}]   ;;  %s1134_s1 = inlined_call_operand.vmem [shape: bf16[20,16], index: 1, kind: input, shape index: {}]   ;;  %s1135_s2 = inlined_call_operand.vmem [shape: f32[20,1], index: 2, kind: input, shape index: {}]   ;;  %s1136_s3 = inlined_call_operand.hbm [shape: bf16[2,2,256], index: 3, kind: output, shape index: {0}]   ;;  %s1137_s4 = inlined_call_operand.hbm [shape: bf16[2,2,256], index: 4, kind: output, shape index: {1}]   ;;  %s1138_s5 = inlined_call_operand.hbm [shape: bf16[2,16,256], index: 5, kind: output, shape index: {2}]  }
   0x1   :  { %1140 = sst [smem:[#allocation9_spill]] %s1133_s0 }
   0x2   :  { %1141 = sst [smem:[#allocation10_spill]] %s1134_s1 }
   0x3   :  { %1142 = sst [smem:[#allocation11_spill]] %s1135_s2 }
   0x4   :  { %11 = vsyncpa [#allocation3], 0 }
   0x5   :  { %13 = vsyncpa [#allocation3 + $0x1], 0 }
   0x6   :  { %14 = vsyncpa [#allocation5], 0 }
   0x7   :  { %16 = vsyncpa [#allocation5 + $0x1], 0  ;;  %s920_s18 = smov 0   ;;  %s922_s19 = smov 0  }
   0x8   :  { %s924_s20 = smov 0   ;;  %s926_s21 = smov 0  }
   0x9   :  { %s928_s22 = smov 0   ;;  %s930_s23 = smov 0  }
   0xa LB: > { %s627_s24 = sadd.s32 4294967295, %s881_s23   ;;  %s1139_s25 = sadd.s32 4294967294, %s881_s23   ;;  %s881_s23 = sphi %s930_s23, %s22_s23   ;;  %s877_s22 = sphi %s928_s22, %s1153_s22   ;;  %s873_s21 = sphi %s926_s21, %s1152_s21   ;;  %s869_s20 = sphi %s924_s20, %s1151_s20   ;;  %s865_s19 = sphi %s922_s19, %s1150_s19   ;;  %s861_s18 = sphi %s920_s18, %s1149_s18  }
   0xb   : > { %s34_s26 = sadd.s32 1, %s877_s22  ;;  %s113_s27 = sadd.s32 1, %s869_s20 }
   0xc   : > { %p36_p0 = scmp.ge.s32.totalorder %s34_s26, 2  ;;  %p123_p1 = scmp.ne.s32.totalorder %s869_s20, %s865_s19 }
   0xd   : > { %p124_p2 = scmp.eq.s32.totalorder %s627_s24, 1  ;;  %p129_p3 = scmp.ne.s32.totalorder %s865_s19, %s861_s18 }
   0xe   : > { %s1155_s26 = smov (%p36_p0, %s34_s26), 0  ;;  %p130_p5 = scmp.eq.s32.totalorder %s1139_s25, 1 }
   0xf   : > { %p962_p4 = por %p124_p2, %p123_p1  ;;  %s108_s29 = ssub.s32 %s877_s22, %s1155_s26 }
  0x10   : > { %p631_p6 = scmp.ge.s32.totalorder %s881_s23, 1  ;;  %p111_p7 = scmp.eq.s32.totalorder %s108_s29, 0 }
  0x11   : > { %p971_p8 = por %p130_p5, %p129_p3  ;;  %p223_p9 = scmp.lt.s32.totalorder %s881_s23, 3 }
  0x12   : > { %s977_s6 = scalar_select %p111_p7, %s869_s20, %s113_s27  }
  0x13   : > { %p224_p10 = pnand %p631_p6, %p223_p9 }
  0x14   : > { %p266_p11 = scmp.lt.s32.totalorder (!%p224_p10), %s873_s21, 1  ;;  %v883_v0 = vmov (!%p224_p10), 0   ;;  %s1145_s2 = sld [smem:[#allocation11_spill]] (!%p224_p10)  ;;  %vm320_vm0 = vcmask (!%p224_p10), 130048   ;;  %v884_v9 = vmov (!%p224_p10), 1966171168   ;;  %v400_v11 = vlaneseq (!%p224_p10) }
  0x15   : > { %227 = sbr.rel (%p224_p10) target bundleno = 316 (0x13c), region = 32  ;;  %359 = vmatprep.mubr.bf16.mxu0 (!%p224_p10), %v883_v0  ;;  %369 = vmatprep.mubr.bf16.mxu1 (!%p224_p10), %v883_v0  ;;  %s1146_s0 = sld [smem:[#allocation9_spill]] (!%p224_p10)  ;;  %v398_v10 = vunpack.c.l.s4 (!%p224_p10), %v884_v9 }
  0x16   : > { %736 = vset.pattern.permute.xlu0 (!%p224_p10), %v883_v0  ;;  %737 = vset.pattern.permute.xlu1 (!%p224_p10), %v883_v0  ;;  %s1147_s1 = sld [smem:[#allocation10_spill]] (!%p224_p10)  ;;  %v401_v14 = vshrl.u32 (!%p224_p10), %v400_v11, 7  ;;  %s1009_s14 = sand.u32 (!%p224_p10), 1, %s627_s24  }
  0x17   : > { %v399_v13 = vunpack.c.0.s8 (!%p224_p10), %v398_v10  ;;  %s662_s15 = sshll.u32 (!%p224_p10), %s873_s21, 5  ;;  %s664_s29 = sshll.u32 (!%p224_p10), %s873_s21, 8 }
  0x18   : > { %s1036_s7 = scalar_lea.hbm (!%p224_p10), %s1138_s5, %s664_s29 }
  0x19   : > { %v402_v24 = vsub.s32 (!%p224_p10), %v399_v13, %v401_v14 }
  0x1a   : > { %v286_v1 = vld [vmem:[%s1145_s2 + $0x10] sm:$0xf] (!%p224_p10)  ;;  %v285_v2 = vld [vmem:[%s1145_s2 + $0x8] sm:$0xff] (!%p224_p10)  ;;  %v284_v3 = vld [vmem:[%s1145_s2] sm:$0xff] (!%p224_p10) }
  0x1b   : > { %299 = vperm.xlu0 (!%p224_p10), %736, %v286_v1   ;;  %294 = vperm.xlu1 (!%p224_p10), %737, %v285_v2  }
  0x1c   : > { %s267_s9 = scalar_select %p266_p11, %s873_s21, 1  ;;  %v741_v6 = vld [vmem:[%s1147_s1] sm:$0xff]   ;;  %v742_v7 = vld [vmem:[%s1147_s1 + $0x8] ss:$0 sps:$4 sm:$0x33]  }
  0x1d   : > { %s1027_s1 = scalar_lea.hbm %s1136_s3, %s662_s15 }
  0x1e   : > { %s659_s12 = sshll.u32 %s267_s9, 4  ;;  %s1000_s9 = sand.u32 1, %s865_s19  }
  0x1f   : > { %s273_s17 = scalar_lea.vmem %s1146_s0, %s659_s12  ;;  %289 = vperm.xlu0 %736, %v284_v3   ;;  %s634_s10 = sshll.u32 %s1000_s9, 4 }
  0x20   : > { %v738_v4 = vld [vmem:[%s273_s17 + $0x4] ss:$8 sps:$4 sm:$0xff]   ;;  %v740_v5 = vld [vmem:[%s273_s17] ss:$8 sps:$4 sm:$0xff]   ;;  %s1003_s11 = scalar_lea.vmem [#allocation6], %s634_s10  ;;  %s632_s13 = sshll.u32 %s1000_s9, 1 }
  0x21   : > { %327 = vmatprep.subr.bf16.mxu0 %v738_v4  ;;  %665 = vmatprep.subr.bf16.mxu1 %v738_v4  ;;  %s481_s12 = sshll.u32 %s1003_s11, 4  ;;  %s250_s16 = scalar_lea.vmem [#allocation2], %s632_s13  ;;  %s1011_s12 = int_to_ptr.vmem [resolvable:$true] %s481_s12 }
  0x22   : > { %328 = vmatpush1.bf16.msra.mxu0 %v740_v5  ;;  %666 = vmatpush1.bf16.msra.mxu1 %v740_v5  ;;  %s450_s24 = sshll.u32 %s250_s16, 4  ;;  %s1014_s17 = scalar_lea.vmem [#allocation4], %s632_s13  ;;  %s1029_s24 = int_to_ptr.vmem [resolvable:$true] %s450_s24 }
  0x23   : > { %s466_s27 = sshll.u32 %s1014_s17, 4  ;;  %s1021_s10 = scalar_lea.hbm %s1137_s4, %s662_s15  ;;  %s1031_s27 = int_to_ptr.vmem [resolvable:$true] %s466_s27 }
  0x24   : > { %s424_s8 = scalar_lea.sflag [#allocation3], %s1000_s9  ;;  %s743_s2 = scalar_lea.vmem %s1029_s24, 32 }
  0x25   : > { %641 = vmatmul.mubr.msk.bf16.vlgmr.msra.gmra.mrb[0].mxu0 %vm320_vm0, %v741_v6  ;;  %642 = vmatmul.mubr.msk.bf16.vlgmr.msra.gmra.mrb[0].mxu1 %vm320_vm0, %v742_v7  ;;  %p744_p12 = scmp.ne.s32.totalorder %s1029_s24, %s743_s2  ;;  %s885_s0 = smov [#allocation2]  }
  0x26   : > { %s747_s25 = sshll.u32 %s885_s0, 4  ;;  %s748_s25 = int_to_ptr.vmem [resolvable:$false] %s747_s25 }
  0x27   : > { %p745_p13 = pnand %p744_p12, %p962_p4  ;;  %s749_s15 = scalar_lea.vmem %s748_s25, 64 }
  0x28   : > { %p750_p1 = scmp.lt.s32.totalorder %s1029_s24, %s748_s25  ;;  %p751_p2 = scmp.lt.s32.totalorder %s749_s15, %s743_s2 }
  0x29   : > { %p746_p0 = pneg %p745_p13 }
  0x2a   : > { %p752_p3 = por %p751_p2, %p750_p1 }
  0x2c   : > { %p753_p5 = pnand %p752_p3, %p746_p0 }
  0x9a   : > { %v300_v8 = vpop.permute.xlu0 %299  ;;  %v295_v15 = vpop.permute.xlu1 %294 }
  0x9e   : > { %v290_v12 = vpop.permute.xlu0 %289 }
  0xf8   : > { %v361_v16 = vpop.f32.mrb[0].mxu0  ;;  %v371_v17 = vpop.f32.mrb[0].mxu1 }
  0xf9   : > { %v372_v18 = vadd.f32 %v371_v17, %v300_v8  ;;  %v362_v19 = vadd.f32 %v361_v16, %v290_v12  ;;  %v363_v20 = vpop.f32.mrb[1].mxu0  ;;  %v373_v21 = vpop.f32.mrb[1].mxu1 }
  0xfa   : > { %v364_v22 = vadd.f32 %v363_v20, %v290_v12  ;;  %v374_v23 = vadd.f32 %v373_v21, %v300_v8  ;;  %v365_v25 = vpop.f32.mrb[2].mxu0  ;;  %v375_v26 = vpop.f32.mrb[2].mxu1 }
  0xfb   : > { %v366_v27 = vadd.f32 %v365_v25, %v295_v15  ;;  %v367_v28 = vpop.f32.mrb[3].mxu0  ;;  %v376_v29 = vpop.f32.mrb[3].mxu1 }
  0xfc   : > { %v660_v30 = vpack.c.bf16 %v364_v22, %v362_v19  ;;  %v645_v31 = vpack.c.bf16 %v374_v23, %v372_v18  ;;  %v368_v32 = vadd.f32 %v367_v28, %v295_v15 }
  0xfe   : > { %390 = vst [vmem:[%s1003_s11] sm:$0xff] %v660_v30  ;;  %v403_v33 = vrot.slane %v645_v31, %v402_v24  ;;  %v661_v34 = vpack.c.bf16 %v368_v32, %v366_v27 }
 0x100   : > { %391 = vst [vmem:[%s1003_s11 + $0x8] sm:$0xff] %v661_v34  ;;  %v413_v35 = vcombine.high %v403_v33, %v403_v33  ;;  %646 = vst.sshfl [vmem:[%s250_s16] sm:$0x5 pattern:$0x73625140] %v403_v33 }
 0x101   : > { %756 = shalt.err (!%p753_p5)
}
 0x102   : > { %s757_s9 = scalar_lea.hbm %s1027_s1, 32  ;;  %s761_s29 = scalar_lea.hbm %s1136_s3, 64 }
 0x103   : > { %p758_p6 = scmp.ne.s32.totalorder %s1027_s1, %s757_s9  ;;  %p762_p10 = scmp.lt.u32.totalorder %s1027_s1, %s1136_s3 }
 0x104   : > { %p763_p11 = scmp.lt.u32.totalorder %s761_s29, %s757_s9  ;;  %p765_p13 = scmp.lt.u32.totalorder %s757_s9, %s1027_s1 }
 0x105   : > { %p759_p7 = pnand %p758_p6, %p962_p4 }
 0x106   : > { %p764_p12 = por %p763_p11, %p762_p10 }
 0x107   : > { %p760_p9 = pneg %p759_p7 }
 0x108   : > { %p766_p0 = por %p765_p13, %p764_p12 }
 0x10a   : > { %p767_p1 = pnand %p766_p0, %p760_p9 }
 0x10c   : > { %770 = shalt.err (!%p767_p1)
}
 0x10d   : > { %667 = dma.vmem_to_hbm [thread:$0]  (%p962_p4), %s1029_s24, 32, %s1027_s1, %s424_s8   ;;  %647 = vst.sshfl [vmem:[%s1014_s17] sm:$0x5 pattern:$0x73625140] %v413_v35 }
 0x10e   : > { %s429_s2 = scalar_lea.sflag [#allocation5], %s1009_s14  ;;  %s771_s0 = scalar_lea.vmem %s1031_s27, 32 }
 0x10f   : > { %p772_p2 = scmp.ne.s32.totalorder %s1031_s27, %s771_s0  ;;  %s886_s25 = smov [#allocation4]  }
 0x110   : > { %s775_s15 = sshll.u32 %s886_s25, 4  ;;  %s776_s15 = int_to_ptr.vmem [resolvable:$false] %s775_s15 }
 0x111   : > { %p773_p3 = pnand %p772_p2, %p962_p4  ;;  %s777_s9 = scalar_lea.vmem %s776_s15, 64 }
 0x112   : > { %p778_p6 = scmp.lt.s32.totalorder %s1031_s27, %s776_s15  ;;  %p779_p7 = scmp.lt.s32.totalorder %s777_s9, %s771_s0 }
 0x113   : > { %p774_p5 = pneg %p773_p3 }
 0x114   : > { %p780_p9 = por %p779_p7, %p778_p6 }
 0x116   : > { %p781_p10 = pnand %p780_p9, %p774_p5 }
 0x118   : > { %784 = shalt.err (!%p781_p10)
}
 0x119   : > { %s785_s1 = scalar_lea.hbm %s1021_s10, 32  ;;  %s789_s8 = scalar_lea.hbm %s1137_s4, 64 }
 0x11a   : > { %p786_p11 = scmp.ne.s32.totalorder %s1021_s10, %s785_s1  ;;  %p790_p0 = scmp.lt.u32.totalorder %s1021_s10, %s1137_s4 }
 0x11b   : > { %p791_p1 = scmp.lt.u32.totalorder %s789_s8, %s785_s1  ;;  %p793_p3 = scmp.lt.u32.totalorder %s785_s1, %s1021_s10 }
 0x11c   : > { %p787_p12 = pnand %p786_p11, %p962_p4 }
 0x11d   : > { %p792_p2 = por %p791_p1, %p790_p0 }
 0x11e   : > { %p788_p13 = pneg %p787_p12 }
 0x11f   : > { %p794_p5 = por %p793_p3, %p792_p2 }
 0x121   : > { %p795_p6 = pnand %p794_p5, %p788_p13 }
 0x123   : > { %798 = shalt.err (!%p795_p6)
}
 0x124   : > { %668 = dma.vmem_to_hbm [thread:$0]  (%p962_p4), %s1031_s27, 32, %s1021_s10, %s429_s2  }
 0x125   : > { %s799_s29 = scalar_lea.vmem %s1011_s12, 256  ;;  %s887_s21 = smov [#allocation6]  }
 0x126   : > { %p800_p7 = scmp.ne.s32.totalorder %s1011_s12, %s799_s29  ;;  %s803_s13 = sshll.u32 %s887_s21, 4  ;;  %s804_s13 = int_to_ptr.vmem [resolvable:$false] %s803_s13 }
 0x127   : > { %s805_s0 = scalar_lea.vmem %s804_s13, 512  ;;  %p806_p11 = scmp.lt.s32.totalorder %s1011_s12, %s804_s13 }
 0x128   : > { %p801_p9 = pnand %p800_p7, %p962_p4  ;;  %p807_p12 = scmp.lt.s32.totalorder %s805_s0, %s799_s29 }
 0x12a   : > { %p802_p10 = pneg %p801_p9  ;;  %p808_p13 = por %p807_p12, %p806_p11 }
 0x12c   : > { %p809_p0 = pnand %p808_p13, %p802_p10 }
 0x12e   : > { %812 = shalt.err (!%p809_p0)
}
 0x12f   : > { %s813_s27 = scalar_lea.hbm %s1036_s7, 256  ;;  %s817_s15 = scalar_lea.hbm %s1138_s5, 512 }
 0x130   : > { %p814_p1 = scmp.ne.s32.totalorder %s1036_s7, %s813_s27  ;;  %p818_p5 = scmp.lt.u32.totalorder %s1036_s7, %s1138_s5 }
 0x131   : > { %p819_p6 = scmp.lt.u32.totalorder %s817_s15, %s813_s27  ;;  %p821_p9 = scmp.lt.u32.totalorder %s813_s27, %s1036_s7 }
 0x132   : > { %p815_p2 = pnand %p814_p1, %p962_p4 }
 0x133   : > { %p820_p7 = por %p819_p6, %p818_p5 }
 0x134   : > { %p816_p3 = pneg %p815_p2 }
 0x135   : > { %p822_p10 = por %p821_p9, %p820_p7 }
 0x137   : > { %p823_p11 = pnand %p822_p10, %p816_p3 }
 0x139   : > { %826 = shalt.err (!%p823_p11)
}
 0x13a   : > { %s888_s24 = smov 128   ;;  %s889_s17 = smov 8  }
 0x13b   : > { %669 = dma.vmem_to_hbm [thread:$0]  (%p962_p4), %s1011_s12, 256, %s1036_s7, %s429_s2, %s888_s24, %s888_s24, %s889_s17  }
 0x13c PF: > { %p683_p12 = scmp.ge.s32.totalorder %s881_s23, 2  ;;  %s496_s8 = sand.u32 1, %s861_s18  }
 0x13d   : > { %s497_s11 = scalar_lea.sflag [#allocation3], %s496_s8 }
 0x13e   : > { %p674_p13 = pnand %p683_p12, %p971_p8 }
 0x140   : > { %852 = dma.done.wait (!%p674_p13), %s497_s11, 32  }
 0x141   : > { %854 = vsyncadd (!%p674_p13), %s497_s11, 4294967264  ;;  %s1148_s16 = sadd.s32 4294967294, %s881_s23  }
 0x142   : > { %s505_s29 = sand.u32 1, %s1148_s16  }
 0x143   : > { %s506_s21 = scalar_lea.sflag [#allocation5], %s505_s29 }
 0x144   : > { %856 = dma.done.wait (!%p674_p13), %s506_s21, 288  }
 0x145   : > { %858 = vsyncadd (!%p674_p13), %s506_s21, 4294967008  ;;  %s22_s23 = sadd.s32 1, %s881_s23   ;;  %s1149_s18 = smov %s865_s19 }
 0x146   : > { %p19_p4 = scmp.ge.s32.totalorder %s22_s23, 4   ;;  %s1150_s19 = smov %s869_s20 }
 0x147   : > { %s1151_s20 = smov %s977_s6  ;;  %s1152_s21 = smov %s877_s22 }
 0x148   : > { %s1153_s22 = smov %s1155_s26  ;;  %21 = sbr.rel (!%p19_p4) target bundleno = 10 (0xa), region = 99 }
 0x14f   :  { %520 = vsyncpa [#allocation3], 1 }
 0x150   :  { %522 = vsyncpa [#allocation3 + $0x1], 1 }
 0x151   :  { %523 = vsyncpa [#allocation5], 1 }
 0x152   :  { %525 = vsyncpa [#allocation5 + $0x1], 1 }

</bundles_post_ra>
